<compile_context>
chip_gen: v6e
topology: v6e:2x2x1
jax: 0.10.0
libtpu: 0.0.40
codegen_flags: <defaults>
</compile_context>

<pallas_src>
import jax
import jax.numpy as jnp
from jax.experimental import pallas as pl
from jax.experimental.pallas import tpu as pltpu

BN_EPS = 1e-5
LEAK = 0.2


def _leaky_relu(x, slope=LEAK):
    # mul + max (one fewer VALU op per element than compare + select).
    return jnp.maximum(x, slope * x)


# ----------------------------------------------------------------------------- kernel
def _make_kernel(act_dtype):
    """Kernel factory; act_dtype = bf16 on chips with bf16 VPU lanes, else f32."""

    def latent_disc_kernel(z_ref, w1_ref, b1_ref, w2_ref, b2_ref, w3_ref, b3_ref,
                           out_ref):
        # Linear(L->H) with BN folded in, then LeakyReLU.  MXU bf16 x bf16 -> f32.
        h = jnp.dot(z_ref[...], w1_ref[...], preferred_element_type=jnp.float32)
        h = _leaky_relu((h + b1_ref[...]).astype(act_dtype))

        # Linear(H->H) with BN folded in, then LeakyReLU (f32, feeds the f32 reduce).
        h = jnp.dot(h.astype(w2_ref.dtype), w2_ref[...],
                    preferred_element_type=jnp.float32)
        h = _leaky_relu(h + b2_ref[...])

        # Dropout(0.2): identity in eval mode.

        # Linear(H->1) as a VPU multiply + lane reduction; write one lane-dense
        # (1, TB) row per tile (single dense vst + contiguous writeback DMA).
        row = jnp.sum(h * w3_ref[...], axis=-1)                    # (TB,)
        out_ref[...] = (row + b3_ref[...]).astype(out_ref.dtype)   # (1, TB)

    return latent_disc_kernel


# --------------------------------------------------------------------------- chip info
def _tpu_generation():
    try:
        kind = jax.devices()[0].device_kind.lower()
    except Exception:
        return 0
    for gen in (7, 6, 5, 4, 3):
        if ("v%d" % gen) in kind or ("tpu%d" % gen) in kind:
            return gen
    return 0


def _vmem_capacity_bytes(gen):
    try:
        return int(pltpu.get_tpu_info().vmem_capacity_bytes)
    except Exception:
        pass
    return (64 << 20) if gen >= 7 else (128 << 20)


def _act_dtype(gen=None, compute_dtype=jnp.bfloat16):
    if gen is None:
        gen = _tpu_generation()
    # v6e/v7x have bf16 VPU lanes; keep activation math in f32 on older chips.
    return compute_dtype if gen >= 6 else jnp.float32


# ---------------------------------------------------------------------- tiling / VMEM
def _round_up(x, m):
    return -(-x // m) * m


def _vmem_estimate(tb, latent, hidden, weight_bufs=2):
    weights = (latent * hidden + hidden * hidden) * 2      # bf16 w1, w2
    weights += (3 * hidden + 1) * 4                        # f32 b1, b2, w3, b3
    io = tb * latent * 2 + tb * 4                          # z tile (bf16) + out row (f32)
    act = 3 * tb * hidden * 4                              # intermediate headroom
    return weight_bufs * weights + 2 * io + act            # z/out are double-buffered


def _choose_tile(batch, latent, hidden, budget, weight_bufs, min_grid):
    """Pick the batch-tile size TB (rows per grid step)."""
    fits = lambda tb: _vmem_estimate(tb, latent, hidden, weight_bufs) <= budget
    b8 = _round_up(batch, 8)
    # Tiny batches: one tile; nothing to gain from splitting, even on 2-TC chips.
    if b8 <= 128:
        return b8
    # Single-step path: whole (8-aligned) batch in one tile when it fits and we are
    # not required to keep >= min_grid steps (v7x wants >= 2 for its second TC).
    if min_grid <= 1 and b8 <= 4096 and fits(b8):
        return b8
    # Gridded path: TB a multiple of 128 (keeps the (1, TB) output blocks
    # lane-aligned), as large as the VMEM budget allows with >= min_grid steps.
    tb = 4096
    while tb > 128 and (not fits(tb) or _round_up(batch, tb) // tb < min_grid):
        tb //= 2
    return tb


# ---------------------------------------------------------------------------- wrapper
def _fold_bn(w, b, gamma, beta, mean, var, eps=BN_EPS):
    """Fold eval-mode BatchNorm1d into the preceding Linear (y = x @ w + b)."""
    scale = gamma * jax.lax.rsqrt(var + eps)                # (1, H)
    return w * scale, (b - mean) * scale + beta


def _forward(z, w1, b1, w2, b2, w3, b3, *, act_dtype, budget, min_grid,
             single_buffer_weights):
    B, L = z.shape
    H = w1.shape[1]
    weight_bufs = 1 if single_buffer_weights else 2

    TB = _choose_tile(B, L, H, budget, weight_bufs, min_grid)
    B_pad = _round_up(B, TB)
    if B_pad != B:
        z = jnp.pad(z, ((0, B_pad - B), (0, 0)))
    grid = (B_pad // TB,)

    # Weights never change across grid steps; request a single VMEM buffer for them
    # (matters most for w2 on v7x's 64 MiB VMEM).
    wkw = {"pipeline_mode": pl.Buffered(1)} if single_buffer_weights else {}
    const = lambda shape: pl.BlockSpec(shape, lambda i: (0, 0), **wkw)

    vmem_limit = int(min(budget,
                         max(_vmem_estimate(TB, L, H, weight_bufs) + (16 << 20),
                             32 << 20)))

    out = pl.pallas_call(
        _make_kernel(act_dtype),
        out_shape=jax.ShapeDtypeStruct((1, B_pad), jnp.float32),
        grid_spec=pltpu.PrefetchScalarGridSpec(
            num_scalar_prefetch=0,
            grid=grid,
            in_specs=[
                pl.BlockSpec((TB, L), lambda i: (i, 0)),   # z: tiled over batch
                const((L, H)),                             # w1 (BN-folded, bf16)
                const((1, H)),                             # b1 (BN-folded, f32)
                const((H, H)),                             # w2 (BN-folded, bf16)
                const((1, H)),                             # b2 (BN-folded, f32)
                const((1, H)),                             # w3 row (f32)
                const((1, 1)),                             # b3 (f32)
            ],
            out_specs=pl.BlockSpec((1, TB), lambda i: (0, i)),   # lane-dense logits row
        ),
        compiler_params=pltpu.CompilerParams(
            dimension_semantics=("parallel",),
            vmem_limit_bytes=vmem_limit,
        ),
    )(z, w1, b1, w2, b2, w3, b3)

    # Slice the padded rows off immediately (padded rows carry garbage logits).
    return out[0, :B].reshape(B, 1)


def latent_discriminator(z, params, *, compute_dtype=jnp.bfloat16):
    """z: [B, latent_size] float32 -> [B, 1] float32 (eval-mode forward)."""
    B, L = z.shape
    H = params["w1"].shape[1]

    # Fold eval-mode BatchNorm into the linears (wrapper-side, plain XLA, tiny).
    w1, b1 = _fold_bn(params["w1"], params["b1"], params["g1"], params["be1"],
                      params["m1"], params["v1"])
    w2, b2 = _fold_bn(params["w2"], params["b2"], params["g2"], params["be2"],
                      params["m2"], params["v2"])
    w3 = params["w3"].reshape(1, H).astype(jnp.float32)   # row vector for VPU reduce
    b3 = params["b3"].reshape(1, 1).astype(jnp.float32)

    z_c = z.astype(compute_dtype)
    w1_c = w1.astype(compute_dtype)
    w2_c = w2.astype(compute_dtype)
    b1 = b1.astype(jnp.float32)
    b2 = b2.astype(jnp.float32)

    gen = _tpu_generation()
    budget = (_vmem_capacity_bytes(gen) * 3) // 4   # ~96 MiB v5e/v6e, ~48 MiB v7x
    min_grid = 2 if gen >= 7 else 1                 # keep both v7x TensorCores busy
    act_dtype = _act_dtype(gen, compute_dtype)

    kwargs = dict(act_dtype=act_dtype, budget=budget, min_grid=min_grid)
    try:
        return _forward(z_c, w1_c, b1, w2_c, b2, w3, b3,
                        single_buffer_weights=True, **kwargs)
    except Exception:
        # Older Pallas without pipeline_mode / Buffered(1): default double-buffering.
        return _forward(z_c, w1_c, b1, w2_c, b2, w3, b3,
                        single_buffer_weights=False, **kwargs)


# ------------------------------------------------------------------------ init & refs
def init_params(key, latent_size, hidden_size):
    """Deterministic init mirroring PyTorch defaults (U(-1/sqrt(fan_in), +...))."""
    ks = jax.random.split(key, 6)

    def lin(kw, kb, fan_in, fan_out):
        bound = 1.0 / jnp.sqrt(fan_in)
        # stored as [in, out] (transpose of PyTorch's [out, in])
        w = jax.random.uniform(kw, (fan_in, fan_out), jnp.float32, -bound, bound)
        b = jax.random.uniform(kb, (1, fan_out), jnp.float32, -bound, bound)
        return w, b

    w1, b1 = lin(ks[0], ks[1], latent_size, hidden_size)
    w2, b2 = lin(ks[2], ks[3], hidden_size, hidden_size)
    w3, b3 = lin(ks[4], ks[5], hidden_size, 1)

    ones = jnp.ones((1, hidden_size), jnp.float32)
    zeros = jnp.zeros((1, hidden_size), jnp.float32)
    return dict(
        w1=w1, b1=b1, g1=ones, be1=zeros, m1=zeros, v1=ones,
        w2=w2, b2=b2, g2=ones, be2=zeros, m2=zeros, v2=ones,
        w3=w3, b3=b3,
    )


def reference_forward(z, p):
    """Plain-JAX f32 reference (eval-mode, unfused), for semantic check."""
    h = z @ p["w1"] + p["b1"]
    h = (h - p["m1"]) * (p["g1"] / jnp.sqrt(p["v1"] + BN_EPS)) + p["be1"]
    h = jnp.where(h > 0, h, LEAK * h)
    h = h @ p["w2"] + p["b2"]
    h = (h - p["m2"]) * (p["g2"] / jnp.sqrt(p["v2"] + BN_EPS)) + p["be2"]
    h = jnp.where(h > 0, h, LEAK * h)
    return h @ p["w3"] + p["b3"]


def reference_forward_folded(z, p, act_dtype=jnp.bfloat16,
                             compute_dtype=jnp.bfloat16):
    """Plain-JAX reference using the same folding + casts as the kernel."""
    w1, b1 = _fold_bn(p["w1"], p["b1"], p["g1"], p["be1"], p["m1"], p["v1"])
    w2, b2 = _fold_bn(p["w2"], p["b2"], p["g2"], p["be2"], p["m2"], p["v2"])
    h = jnp.dot(z.astype(compute_dtype), w1.astype(compute_dtype),
                preferred_element_type=jnp.float32)
    h = _leaky_relu((h + b1).astype(act_dtype))
    h = jnp.dot(h.astype(compute_dtype), w2.astype(compute_dtype),
                preferred_element_type=jnp.float32)
    h = _leaky_relu(h + b2)
    return (jnp.sum(h * p["w3"].reshape(1, -1), axis=-1, keepdims=True)
            + p["b3"].reshape(1, 1))


if __name__ == "__main__":
    B, LATENT, HIDDEN = 8, 16, 32
    key = jax.random.PRNGKey(0)
    kz, kp = jax.random.split(key)
    z = jax.random.normal(kz, (B, LATENT), jnp.float32)
    params = init_params(kp, LATENT, HIDDEN)

    out = jax.block_until_ready(latent_discriminator(z, params))
    assert out.shape == (B, 1)

    # Tight check vs. a plain-JAX reference doing the same folding / casts.
    ref_bf16 = reference_forward_folded(z, params, act_dtype=_act_dtype())
    assert jnp.allclose(out, ref_bf16, atol=1e-2, rtol=1e-2), (out, ref_bf16)
    # Loose check vs. the pure-f32, unfused reference (bf16 MXU inputs -> wider tol).
    ref_f32 = reference_forward(z, params)
    assert jnp.allclose(out, ref_f32, atol=1e-1, rtol=1e-1), (out, ref_f32)
    print("KERNEL_OK")
</pallas_src>

<mosaic_0001>
module attributes {stable_mosaic.version = 11 : i64} {
  func.func @latent_disc_kernel(%arg0: i32, %arg1: memref<8x16xbf16, #tpu.memory_space<vmem>>, %arg2: memref<16x32xbf16, #tpu.memory_space<vmem>>, %arg3: memref<1x32xf32, #tpu.memory_space<vmem>>, %arg4: memref<32x32xbf16, #tpu.memory_space<vmem>>, %arg5: memref<1x32xf32, #tpu.memory_space<vmem>>, %arg6: memref<1x32xf32, #tpu.memory_space<vmem>>, %arg7: memref<1x1xf32, #tpu.memory_space<vmem>>, %arg8: memref<1x8xf32, #tpu.memory_space<vmem>>) attributes {dimension_semantics = [#tpu.dimension_semantics<parallel>], iteration_bounds = array<i64: 1>, scalar_prefetch = 0 : i64, scratch_operands = 0 : i64, tpu.core_type = #tpu.core_type<tc>, window_params = [{transform_indices = @transform_0, window_bounds = array<i64: 8, 16>}, {pipeline_mode = #tpu.pipeline_mode<synchronous>, transform_indices = @transform_1, window_bounds = array<i64: 16, 32>}, {pipeline_mode = #tpu.pipeline_mode<synchronous>, transform_indices = @transform_2, window_bounds = array<i64: 1, 32>}, {pipeline_mode = #tpu.pipeline_mode<synchronous>, transform_indices = @transform_3, window_bounds = array<i64: 32, 32>}, {pipeline_mode = #tpu.pipeline_mode<synchronous>, transform_indices = @transform_4, window_bounds = array<i64: 1, 32>}, {pipeline_mode = #tpu.pipeline_mode<synchronous>, transform_indices = @transform_5, window_bounds = array<i64: 1, 32>}, {pipeline_mode = #tpu.pipeline_mode<synchronous>, transform_indices = @transform_6, window_bounds = array<i64: 1, 1>}, {transform_indices = @transform_7, window_bounds = array<i64: 1, 8>}]} {
    %c0 = arith.constant 0 : index
    %c0_0 = arith.constant 0 : index
    %0 = vector.load %arg1[%c0, %c0_0] : memref<8x16xbf16, #tpu.memory_space<vmem>>, vector<8x16xbf16>
    %c0_1 = arith.constant 0 : index
    %c0_2 = arith.constant 0 : index
    %1 = vector.load %arg2[%c0_1, %c0_2] : memref<16x32xbf16, #tpu.memory_space<vmem>>, vector<16x32xbf16>
    %cst = arith.constant dense<0.000000e+00> : vector<8x32xf32>
    %2 = tpu.matmul %0, %1, %cst {dimension_numbers = #tpu.dot_dimension_numbers<[1], [0], [0], [1], [0, 0, 1, 1], [], []>} : vector<8x16xbf16>, vector<16x32xbf16>, vector<8x32xf32> -> vector<8x32xf32>
    %c0_3 = arith.constant 0 : index
    %c0_4 = arith.constant 0 : index
    %3 = vector.load %arg3[%c0_3, %c0_4] : memref<1x32xf32, #tpu.memory_space<vmem>>, vector<1x32xf32>
    %4 = vector.broadcast %3 : vector<1x32xf32> to vector<8x32xf32>
    %5 = arith.addf %2, %4 : vector<8x32xf32>
    %cst_5 = arith.constant 2.000000e-01 : f32
    %6 = vector.broadcast %cst_5 : f32 to vector<8x32xf32>
    %7 = arith.mulf %6, %5 : vector<8x32xf32>
    %8 = arith.maximumf %5, %7 : vector<8x32xf32>
    %9 = arith.truncf %8 : vector<8x32xf32> to vector<8x32xbf16>
    %c0_6 = arith.constant 0 : index
    %c0_7 = arith.constant 0 : index
    %10 = vector.load %arg4[%c0_6, %c0_7] : memref<32x32xbf16, #tpu.memory_space<vmem>>, vector<32x32xbf16>
    %cst_8 = arith.constant dense<0.000000e+00> : vector<8x32xf32>
    %11 = tpu.matmul %9, %10, %cst_8 {dimension_numbers = #tpu.dot_dimension_numbers<[1], [0], [0], [1], [0, 0, 1, 1], [], []>} : vector<8x32xbf16>, vector<32x32xbf16>, vector<8x32xf32> -> vector<8x32xf32>
    %c0_9 = arith.constant 0 : index
    %c0_10 = arith.constant 0 : index
    %12 = vector.load %arg5[%c0_9, %c0_10] : memref<1x32xf32, #tpu.memory_space<vmem>>, vector<1x32xf32>
    %13 = vector.broadcast %12 : vector<1x32xf32> to vector<8x32xf32>
    %14 = arith.addf %11, %13 : vector<8x32xf32>
    %cst_11 = arith.constant 2.000000e-01 : f32
    %15 = vector.broadcast %cst_11 : f32 to vector<8x32xf32>
    %16 = arith.mulf %15, %14 : vector<8x32xf32>
    %17 = arith.maximumf %14, %16 : vector<8x32xf32>
    %c0_12 = arith.constant 0 : index
    %c0_13 = arith.constant 0 : index
    %18 = vector.load %arg6[%c0_12, %c0_13] : memref<1x32xf32, #tpu.memory_space<vmem>>, vector<1x32xf32>
    %19 = vector.broadcast %18 : vector<1x32xf32> to vector<8x32xf32>
    %20 = arith.mulf %17, %19 : vector<8x32xf32>
    %cst_14 = arith.constant dense<0.000000e+00> : vector<8xf32>
    %21 = vector.multi_reduction <add>, %20, %cst_14 [1] : vector<8x32xf32> to vector<8xf32>
    %c0_15 = arith.constant 0 : index
    %c0_16 = arith.constant 0 : index
    %22 = vector.load %arg7[%c0_15, %c0_16] : memref<1x1xf32, #tpu.memory_space<vmem>>, vector<1x1xf32>
    %23 = vector.shape_cast %21 : vector<8xf32> to vector<1x8xf32>
    %24 = vector.broadcast %22 : vector<1x1xf32> to vector<1x8xf32>
    %25 = arith.addf %23, %24 : vector<1x8xf32>
    %c0_17 = arith.constant 0 : index
    %c0_18 = arith.constant 0 : index
    %26 = vector.load %arg8[%c0_17, %c0_18] : memref<1x8xf32, #tpu.memory_space<vmem>>, vector<1x8xf32>
    tpu.vector_store %arg8[%c0_17, %c0_18], %25 {strides = array<i32>} : memref<1x8xf32, #tpu.memory_space<vmem>>, vector<1x8xf32>,
    return
  }
  func.func @transform_0(%arg0: i32) -> (i32, i32) {
    %c0_i32 = arith.constant 0 : i32
    %c0_i32_0 = arith.constant 0 : i32
    return %arg0, %c0_i32 : i32, i32
  }
  func.func @transform_1(%arg0: i32) -> (i32, i32) {
    %c0_i32 = arith.constant 0 : i32
    %c0_i32_0 = arith.constant 0 : i32
    %c0_i32_1 = arith.constant 0 : i32
    return %c0_i32, %c0_i32_0 : i32, i32
  }
  func.func @transform_2(%arg0: i32) -> (i32, i32) {
    %c0_i32 = arith.constant 0 : i32
    %c0_i32_0 = arith.constant 0 : i32
    %c0_i32_1 = arith.constant 0 : i32
    return %c0_i32, %c0_i32_0 : i32, i32
  }
  func.func @transform_3(%arg0: i32) -> (i32, i32) {
    %c0_i32 = arith.constant 0 : i32
    %c0_i32_0 = arith.constant 0 : i32
    %c0_i32_1 = arith.constant 0 : i32
    return %c0_i32, %c0_i32_0 : i32, i32
  }
  func.func @transform_4(%arg0: i32) -> (i32, i32) {
    %c0_i32 = arith.constant 0 : i32
    %c0_i32_0 = arith.constant 0 : i32
    %c0_i32_1 = arith.constant 0 : i32
    return %c0_i32, %c0_i32_0 : i32, i32
  }
  func.func @transform_5(%arg0: i32) -> (i32, i32) {
    %c0_i32 = arith.constant 0 : i32
    %c0_i32_0 = arith.constant 0 : i32
    %c0_i32_1 = arith.constant 0 : i32
    return %c0_i32, %c0_i32_0 : i32, i32
  }
  func.func @transform_6(%arg0: i32) -> (i32, i32) {
    %c0_i32 = arith.constant 0 : i32
    %c0_i32_0 = arith.constant 0 : i32
    %c0_i32_1 = arith.constant 0 : i32
    return %c0_i32, %c0_i32_0 : i32, i32
  }
  func.func @transform_7(%arg0: i32) -> (i32, i32) {
    %c0_i32 = arith.constant 0 : i32
    %c0_i32_0 = arith.constant 0 : i32
    return %c0_i32, %arg0 : i32, i32
  }
}

module attributes {stable_mosaic.version = 11 : i64} {
  func.func @latent_disc_kernel(%arg0: i32, %arg1: memref<8x16xbf16, #tpu.memory_space<vmem>>, %arg2: memref<16x32xbf16, #tpu.memory_space<vmem>>, %arg3: memref<1x32xf32, #tpu.memory_space<vmem>>, %arg4: memref<32x32xbf16, #tpu.memory_space<vmem>>, %arg5: memref<1x32xf32, #tpu.memory_space<vmem>>, %arg6: memref<1x32xf32, #tpu.memory_space<vmem>>, %arg7: memref<1x1xf32, #tpu.memory_space<vmem>>, %arg8: memref<1x8xf32, #tpu.memory_space<vmem>>) attributes {dimension_semantics = [#tpu.dimension_semantics<parallel>], iteration_bounds = array<i64: 1>, scalar_prefetch = 0 : i64, scratch_operands = 0 : i64, tpu.core_type = #tpu.core_type<tc>, window_params = [{transform_indices = @transform_0, window_bounds = array<i64: 8, 16>}, {pipeline_mode = #tpu.pipeline_mode<synchronous>, transform_indices = @transform_1, window_bounds = array<i64: 16, 32>}, {pipeline_mode = #tpu.pipeline_mode<synchronous>, transform_indices = @transform_2, window_bounds = array<i64: 1, 32>}, {pipeline_mode = #tpu.pipeline_mode<synchronous>, transform_indices = @transform_3, window_bounds = array<i64: 32, 32>}, {pipeline_mode = #tpu.pipeline_mode<synchronous>, transform_indices = @transform_4, window_bounds = array<i64: 1, 32>}, {pipeline_mode = #tpu.pipeline_mode<synchronous>, transform_indices = @transform_5, window_bounds = array<i64: 1, 32>}, {pipeline_mode = #tpu.pipeline_mode<synchronous>, transform_indices = @transform_6, window_bounds = array<i64: 1, 1>}, {transform_indices = @transform_7, window_bounds = array<i64: 1, 8>}]} {
    %c0 = arith.constant 0 : index
    %c0_0 = arith.constant 0 : index
    %0 = vector.load %arg1[%c0, %c0_0] : memref<8x16xbf16, #tpu.memory_space<vmem>>, vector<8x16xbf16>
    %c0_1 = arith.constant 0 : index
    %c0_2 = arith.constant 0 : index
    %1 = vector.load %arg2[%c0_1, %c0_2] : memref<16x32xbf16, #tpu.memory_space<vmem>>, vector<16x32xbf16>
    %cst = arith.constant dense<0.000000e+00> : vector<8x32xf32>
    %2 = tpu.matmul %0, %1, %cst {dimension_numbers = #tpu.dot_dimension_numbers<[1], [0], [0], [1], [0, 0, 1, 1], [], []>} : vector<8x16xbf16>, vector<16x32xbf16>, vector<8x32xf32> -> vector<8x32xf32>
    %c0_3 = arith.constant 0 : index
    %c0_4 = arith.constant 0 : index
    %3 = vector.load %arg3[%c0_3, %c0_4] : memref<1x32xf32, #tpu.memory_space<vmem>>, vector<1x32xf32>
    %4 = vector.broadcast %3 : vector<1x32xf32> to vector<8x32xf32>
    %5 = arith.addf %2, %4 : vector<8x32xf32>
    %cst_5 = arith.constant 2.000000e-01 : f32
    %6 = vector.broadcast %cst_5 : f32 to vector<8x32xf32>
    %7 = arith.mulf %6, %5 : vector<8x32xf32>
    %8 = arith.maximumf %5, %7 : vector<8x32xf32>
    %9 = arith.truncf %8 : vector<8x32xf32> to vector<8x32xbf16>
    %c0_6 = arith.constant 0 : index
    %c0_7 = arith.constant 0 : index
    %10 = vector.load %arg4[%c0_6, %c0_7] : memref<32x32xbf16, #tpu.memory_space<vmem>>, vector<32x32xbf16>
    %cst_8 = arith.constant dense<0.000000e+00> : vector<8x32xf32>
    %11 = tpu.matmul %9, %10, %cst_8 {dimension_numbers = #tpu.dot_dimension_numbers<[1], [0], [0], [1], [0, 0, 1, 1], [], []>} : vector<8x32xbf16>, vector<32x32xbf16>, vector<8x32xf32> -> vector<8x32xf32>
    %c0_9 = arith.constant 0 : index
    %c0_10 = arith.constant 0 : index
    %12 = vector.load %arg5[%c0_9, %c0_10] : memref<1x32xf32, #tpu.memory_space<vmem>>, vector<1x32xf32>
    %13 = vector.broadcast %12 : vector<1x32xf32> to vector<8x32xf32>
    %14 = arith.addf %11, %13 : vector<8x32xf32>
    %cst_11 = arith.constant 2.000000e-01 : f32
    %15 = vector.broadcast %cst_11 : f32 to vector<8x32xf32>
    %16 = arith.mulf %15, %14 : vector<8x32xf32>
    %17 = arith.maximumf %14, %16 : vector<8x32xf32>
    %c0_12 = arith.constant 0 : index
    %c0_13 = arith.constant 0 : index
    %18 = vector.load %arg6[%c0_12, %c0_13] : memref<1x32xf32, #tpu.memory_space<vmem>>, vector<1x32xf32>
    %19 = vector.broadcast %18 : vector<1x32xf32> to vector<8x32xf32>
    %20 = arith.mulf %17, %19 : vector<8x32xf32>
    %cst_14 = arith.constant dense<0.000000e+00> : vector<8xf32>
    %21 = vector.multi_reduction <add>, %20, %cst_14 [1] : vector<8x32xf32> to vector<8xf32>
    %c0_15 = arith.constant 0 : index
    %c0_16 = arith.constant 0 : index
    %22 = vector.load %arg7[%c0_15, %c0_16] : memref<1x1xf32, #tpu.memory_space<vmem>>, vector<1x1xf32>
    %23 = vector.shape_cast %21 : vector<8xf32> to vector<1x8xf32>
    %24 = vector.broadcast %22 : vector<1x1xf32> to vector<1x8xf32>
    %25 = arith.addf %23, %24 : vector<1x8xf32>
    %c0_17 = arith.constant 0 : index
    %c0_18 = arith.constant 0 : index
    %26 = vector.load %arg8[%c0_17, %c0_18] : memref<1x8xf32, #tpu.memory_space<vmem>>, vector<1x8xf32>
    tpu.vector_store %arg8[%c0_17, %c0_18], %25 {strides = array<i32>} : memref<1x8xf32, #tpu.memory_space<vmem>>, vector<1x8xf32>,
    return
  }
  func.func @transform_0(%arg0: i32) -> (i32, i32) {
    %c0_i32 = arith.constant 0 : i32
    %c0_i32_0 = arith.constant 0 : i32
    return %arg0, %c0_i32 : i32, i32
  }
  func.func @transform_1(%arg0: i32) -> (i32, i32) {
    %c0_i32 = arith.constant 0 : i32
    %c0_i32_0 = arith.constant 0 : i32
    %c0_i32_1 = arith.constant 0 : i32
    return %c0_i32, %c0_i32_0 : i32, i32
  }
  func.func @transform_2(%arg0: i32) -> (i32, i32) {
    %c0_i32 = arith.constant 0 : i32
    %c0_i32_0 = arith.constant 0 : i32
    %c0_i32_1 = arith.constant 0 : i32
    return %c0_i32, %c0_i32_0 : i32, i32
  }
  func.func @transform_3(%arg0: i32) -> (i32, i32) {
    %c0_i32 = arith.constant 0 : i32
    %c0_i32_0 = arith.constant 0 : i32
    %c0_i32_1 = arith.constant 0 : i32
    return %c0_i32, %c0_i32_0 : i32, i32
  }
  func.func @transform_4(%arg0: i32) -> (i32, i32) {
    %c0_i32 = arith.constant 0 : i32
    %c0_i32_0 = arith.constant 0 : i32
    %c0_i32_1 = arith.constant 0 : i32
    return %c0_i32, %c0_i32_0 : i32, i32
  }
  func.func @transform_5(%arg0: i32) -> (i32, i32) {
    %c0_i32 = arith.constant 0 : i32
    %c0_i32_0 = arith.constant 0 : i32
    %c0_i32_1 = arith.constant 0 : i32
    return %c0_i32, %c0_i32_0 : i32, i32
  }
  func.func @transform_6(%arg0: i32) -> (i32, i32) {
    %c0_i32 = arith.constant 0 : i32
    %c0_i32_0 = arith.constant 0 : i32
    %c0_i32_1 = arith.constant 0 : i32
    return %c0_i32, %c0_i32_0 : i32, i32
  }
  func.func @transform_7(%arg0: i32) -> (i32, i32) {
    %c0_i32 = arith.constant 0 : i32
    %c0_i32_0 = arith.constant 0 : i32
    return %c0_i32, %arg0 : i32, i32
  }
}

</mosaic_0001>

<bundles_post_ra>
// kernel: tpu_custom_call.1
= control target key start
LH: loop header
LB: loop body
LE: loop exit
PB: predicated region body
PF: predicated region fallthrough
CT: control target
= control target key end

     0   :  { %s448_s0 = inlined_call_operand.hbm [shape: bf16[8,16], index: 0, kind: input, shape index: {}]   ;;  %s449_s1 = inlined_call_operand.hbm [shape: bf16[16,32], index: 1, kind: input, shape index: {}]   ;;  %s450_s2 = inlined_call_operand.vmem [shape: f32[1,32], index: 2, kind: input, shape index: {}]   ;;  %s451_s3 = inlined_call_operand.hbm [shape: bf16[32,32], index: 3, kind: input, shape index: {}]   ;;  %s452_s4 = inlined_call_operand.vmem [shape: f32[1,32], index: 4, kind: input, shape index: {}]   ;;  %s453_s5 = inlined_call_operand.vmem [shape: f32[1,32], index: 5, kind: input, shape index: {}]   ;;  %s454_s6 = inlined_call_operand.<no memory space> [shape: f32[1,1], index: 6, kind: input, shape index: {}]   ;;  %s455_s7 = inlined_call_operand.hbm [shape: f32[1,8], index: 7, kind: output, shape index: {}]  }
   0x1   :  { %v12_v0 = vstv %s454_s6 }
   0x2   :  { %13 = vst [vmem:[#allocation2] sm:$0x1] %v12_v0 }
   0x3   :  { %14 = vsyncpa [#allocation4], 0 }
   0x4   :  { %15 = vsyncpa [#allocation7], 0 }
   0x5   :  { %16 = vsyncpa [#allocation5], 0  ;;  %s375_s26 = smov [#allocation6]  }
   0x6   :  { %s32_s27 = sshll.u32 %s375_s26, 4  ;;  %s33_s27 = int_to_ptr.vmem [resolvable:$true] %s32_s27 }
   0x7   :  { %s297_s28 = scalar_lea.vmem %s33_s27, 128  ;;  %p302_p1 = scmp.lt.s32.totalorder %s33_s27, %s33_s27 }
   0x8   :  { %p298_p0 = scmp.ne.s32.totalorder %s33_s27, %s297_s28  ;;  %p303_p2 = scmp.lt.s32.totalorder %s297_s28, %s297_s28 }
   0xa   :  { %p304_p3 = por %p303_p2, %p302_p1 }
   0xc   :  { %p305_p4 = pnand %p304_p3, %p298_p0 }
   0xe   :  { %308 = shalt.err (!%p305_p4)
}
   0xf   :  { %s376_s29 = smov 64   ;;  %s377_s30 = smov 4  }
  0x10   :  { %38 = dma.hbm_to_vmem [thread:$0]  %s449_s1, 128, %s33_s27, [#allocation7], %s376_s29, %s376_s29, %s377_s30  }
  0x11   :  { %s378_s6 = smov [#allocation3]   ;;  %s379_s11 = smov [#allocation8]  }
  0x12   :  { %s23_s10 = sshll.u32 %s378_s6, 4  ;;  %s46_s12 = sshll.u32 %s379_s11, 4  ;;  %s24_s10 = int_to_ptr.vmem [resolvable:$true] %s23_s10  ;;  %s47_s12 = int_to_ptr.vmem [resolvable:$true] %s46_s12 }
  0x13   :  { %s317_s13 = scalar_lea.vmem %s24_s10, 64  ;;  %p322_p6 = scmp.lt.s32.totalorder %s24_s10, %s24_s10 }
  0x14   :  { %p318_p5 = scmp.ne.s32.totalorder %s24_s10, %s317_s13  ;;  %p323_p7 = scmp.lt.s32.totalorder %s317_s13, %s317_s13 }
  0x16   :  { %p324_p8 = por %p323_p7, %p322_p6 }
  0x18   :  { %p325_p9 = pnand %p324_p8, %p318_p5 }
  0x1a   :  { %328 = shalt.err (!%p325_p9)
}
  0x1b   :  { %26 = dma.hbm_to_vmem [thread:$0]  %s448_s0, 64, %s24_s10, [#allocation4]  }
  0x1c   :  { %s337_s16 = scalar_lea.vmem %s47_s12, 256  ;;  %p342_p11 = scmp.lt.s32.totalorder %s47_s12, %s47_s12 }
  0x1d   :  { %p338_p10 = scmp.ne.s32.totalorder %s47_s12, %s337_s16  ;;  %p343_p12 = scmp.lt.s32.totalorder %s337_s16, %s337_s16 }
  0x1f   :  { %p344_p13 = por %p343_p12, %p342_p11 }
  0x21   :  { %p345_p0 = pnand %p344_p13, %p338_p10 }
  0x23   :  { %348 = shalt.err (!%p345_p0)
}
  0x24   :  { %52 = dma.hbm_to_vmem [thread:$0]  %s451_s3, 256, %s47_s12, [#allocation7], %s376_s29, %s376_s29, %s377_s30  }
  0x25   :  { %369 = dma.done.wait [#allocation4], 64  }
  0x26   :  { %370 = vsyncadd [#allocation4], 4294967232 }
  0x27   :  { %371 = dma.done.wait [#allocation7], 384  }
  0x28   :  { %372 = vsyncadd [#allocation7], 4294966912  ;;  %v380_v1 = vmov 0.0   ;;  %vm381_vm0 = vmmov 0   ;;  %v286_v2 = vld [vmem:[#allocation6] sm:$0xff]   ;;  %vm85_vm1 = vcmask 130048   ;;  %v218_v28 = vlaneseq }
  0x29   :  { %262 = vmatprep.subr.bf16.mxu0 %v380_v1  ;;  %264 = vmatprep.mubr.msk.bf16.mxu0 %vm381_vm0, %v380_v1  ;;  %v69_v3 = vld [vmem:[#allocation3] sm:$0xf]  ;;  %v287_v4 = vld [vmem:[#allocation8 + $0x8] sm:$0xff]   ;;  %v288_v5 = vld [vmem:[#allocation8] sm:$0xff]   ;;  %vm155_vm2 = vcmask 261120   ;;  %v382_v15 = vmov 0  }
  0x2a   :  { %268 = vmatprep.subr.bf16.mxu1 %v380_v1  ;;  %272 = vmatprep.mubr.msk.bf16.mxu1 %vm381_vm0, %v380_v1  ;;  %v249_v6 = vld [vmem:[%s450_s2] ss:$0 sm:$0xff]  ;;  %v219_v29 = vshrl.u32 %v218_v28, 7  ;;  %v225_v32 = vand.u32 127, %v218_v28  ;;  %vm231_vm3 = vcmask 57344  }
  0x2b   :  { %263 = vmatpush3.bf16.msra.mxu0 %v286_v2  ;;  %269 = vmatpush3.bf16.msra.mxu1 %v287_v4  ;;  %v252_v16 = vld [vmem:[%s452_s4] ss:$0 sm:$0xff]  ;;  %s383_s4 = smov [#allocation9]  }
  0x2c   :  { %270 = vmatprep.subr.bf16.mxu1 %v380_v1  ;;  %285 = vset.pattern.permute.xlu0 %v382_v15  ;;  %v256_v22 = vld [vmem:[%s453_s5] ss:$0 sm:$0xff]  ;;  %v220_v31 = vsub.s32 0, %v219_v29  ;;  %v228_v34 = vsub.s32 %v225_v32, %v219_v29  ;;  %s239_s21 = sshll.u32 %s383_s4, 4  ;;  %s240_s21 = int_to_ptr.vmem [resolvable:$true] %s239_s21 }
  0x2d   :  { %v212_v27 = vld [vmem:[#allocation2] sm:$0x1]  ;;  %s349_s5 = scalar_lea.vmem %s240_s21, 16  ;;  %s353_s22 = scalar_lea.vmem %s240_s21, 32 }
  0x2e   :  { %265 = vmatmul.mubr.msk.bf16.vlgmr.msra.gmra.mxu0 %vm85_vm1, %v69_v3  ;;  %p350_p1 = scmp.ne.s32.totalorder %s240_s21, %s349_s5  ;;  %p354_p2 = scmp.lt.s32.totalorder %s240_s21, %s240_s21 }
  0x2f   :  { %271 = vmatpush3.bf16.msra.mxu1 %v288_v5  ;;  %p355_p3 = scmp.lt.s32.totalorder %s353_s22, %s349_s5 }
  0x31   :  { %p356_p4 = por %p355_p3, %p354_p2 }
  0x33   :  { %p357_p5 = pnand %p356_p4, %p350_p1 }
  0xee   :  { %v123_v7 = vpop.f32.mrf.mxu0 }
  0xef   :  { %v124_v8 = vadd.f32 %v249_v6, %v123_v7 }
  0xf0   :  { %v266_v9 = vpop.f32.mrf.mxu0 }
  0xf1   :  { %v129_v10 = vmul.f32 0.2, %v124_v8 }
  0xf2   :  { %v126_v11 = vpop.f32.mrf.mxu0 }
  0xf3   :  { %v130_v12 = vmax.f32 %v124_v8, %v129_v10 }
  0xf4   :  { %v267_v13 = vpop.f32.mrf.mxu0 }
  0xf5   :  { %v131_v14 = vpack.c.bf16 %v130_v12, %v130_v12 }
  0xf7   :  { %273 = vmatmul.mubr.msk.bf16.vlgmr.msra.gmra.mxu1 %vm155_vm2, %v131_v14 }
 0x1b7   :  { %v193_v17 = vpop.f32.mrf.mxu1 }
 0x1b8   :  { %v194_v18 = vadd.f32 %v252_v16, %v193_v17 }
 0x1b9   :  { %v274_v19 = vpop.f32.mrf.mxu1 }
 0x1ba   :  { %v199_v20 = vmul.f32 0.2, %v194_v18 }
 0x1bb   :  { %v196_v21 = vpop.f32.mrf.mxu1 }
 0x1bc   :  { %v200_v23 = vmax.f32 %v194_v18, %v199_v20 }
 0x1bd   :  { %v275_v24 = vpop.f32.mrf.mxu1 }
 0x1be   :  { %v208_v25 = vmul.f32 %v256_v22, %v200_v23 }
 0x1c0   :  { %v209_v26 = vsel %vm155_vm2, %v208_v25, 0.0 }
 0x1c1   :  { %210 = vadd.xlane.f32.xlu0 %v209_v26 }
 0x1d7   :  { %215 = vperm.xlu0 %285, %v212_v27  }
 0x24a   :  { %v211_v30 = vpop.xlane.xlu0 %210 }
 0x252   :  { %v216_v33 = vpop.permute.xlu0 %215 }
 0x253   :  { %v221_v35 = vrot.slane %v216_v33, %v220_v31 }
 0x255   :  { %v222_v36 = vadd.f32 %v221_v35, %v211_v30 }
 0x257   :  { %v229_v37 = vrot.slane %v222_v36, %v228_v34 }
 0x259   :  { %232 = vst.msk [vmem:[#allocation9] sm:$0x1] %vm231_vm3, %v229_v37 }
 0x25a   :  { %360 = shalt.err (!%p357_p5)
}
 0x25b   :  { %242 = dma.vmem_to_hbm [thread:$0]  %s240_s21, 16, %s455_s7, [#allocation5]  }
 0x25c   :  { %373 = dma.done.wait [#allocation5], 16  }
 0x25d   :  { %374 = vsyncadd [#allocation5], 4294967280 }
 0x25e   :  { %246 = vsyncpa [#allocation4], 1 }
 0x25f   :  { %247 = vsyncpa [#allocation7], 1 }
 0x260   :  { %248 = vsyncpa [#allocation5], 1 }

// kernel: tpu_custom_call.1
= control target key start
LH: loop header
LB: loop body
LE: loop exit
PB: predicated region body
PF: predicated region fallthrough
CT: control target
= control target key end

     0   :  { %s448_s0 = inlined_call_operand.hbm [shape: bf16[8,16], index: 0, kind: input, shape index: {}]   ;;  %s449_s1 = inlined_call_operand.hbm [shape: bf16[16,32], index: 1, kind: input, shape index: {}]   ;;  %s450_s2 = inlined_call_operand.vmem [shape: f32[1,32], index: 2, kind: input, shape index: {}]   ;;  %s451_s3 = inlined_call_operand.hbm [shape: bf16[32,32], index: 3, kind: input, shape index: {}]   ;;  %s452_s4 = inlined_call_operand.vmem [shape: f32[1,32], index: 4, kind: input, shape index: {}]   ;;  %s453_s5 = inlined_call_operand.vmem [shape: f32[1,32], index: 5, kind: input, shape index: {}]   ;;  %s454_s6 = inlined_call_operand.<no memory space> [shape: f32[1,1], index: 6, kind: input, shape index: {}]   ;;  %s455_s7 = inlined_call_operand.hbm [shape: f32[1,8], index: 7, kind: output, shape index: {}]  }
   0x1   :  { %v12_v0 = vstv %s454_s6 }
   0x2   :  { %13 = vst [vmem:[#allocation2] sm:$0x1] %v12_v0 }
   0x3   :  { %14 = vsyncpa [#allocation4], 0 }
   0x4   :  { %15 = vsyncpa [#allocation7], 0 }
   0x5   :  { %16 = vsyncpa [#allocation5], 0  ;;  %s375_s26 = smov [#allocation6]  }
   0x6   :  { %s32_s27 = sshll.u32 %s375_s26, 4  ;;  %s33_s27 = int_to_ptr.vmem [resolvable:$true] %s32_s27 }
   0x7   :  { %s297_s28 = scalar_lea.vmem %s33_s27, 128  ;;  %p302_p1 = scmp.lt.s32.totalorder %s33_s27, %s33_s27 }
   0x8   :  { %p298_p0 = scmp.ne.s32.totalorder %s33_s27, %s297_s28  ;;  %p303_p2 = scmp.lt.s32.totalorder %s297_s28, %s297_s28 }
   0xa   :  { %p304_p3 = por %p303_p2, %p302_p1 }
   0xc   :  { %p305_p4 = pnand %p304_p3, %p298_p0 }
   0xe   :  { %308 = shalt.err (!%p305_p4)
}
   0xf   :  { %s376_s29 = smov 64   ;;  %s377_s30 = smov 4  }
  0x10   :  { %38 = dma.hbm_to_vmem [thread:$0]  %s449_s1, 128, %s33_s27, [#allocation7], %s376_s29, %s376_s29, %s377_s30  }
  0x11   :  { %s378_s6 = smov [#allocation3]   ;;  %s379_s11 = smov [#allocation8]  }
  0x12   :  { %s23_s10 = sshll.u32 %s378_s6, 4  ;;  %s46_s12 = sshll.u32 %s379_s11, 4  ;;  %s24_s10 = int_to_ptr.vmem [resolvable:$true] %s23_s10  ;;  %s47_s12 = int_to_ptr.vmem [resolvable:$true] %s46_s12 }
  0x13   :  { %s317_s13 = scalar_lea.vmem %s24_s10, 64  ;;  %p322_p6 = scmp.lt.s32.totalorder %s24_s10, %s24_s10 }
  0x14   :  { %p318_p5 = scmp.ne.s32.totalorder %s24_s10, %s317_s13  ;;  %p323_p7 = scmp.lt.s32.totalorder %s317_s13, %s317_s13 }
  0x16   :  { %p324_p8 = por %p323_p7, %p322_p6 }
  0x18   :  { %p325_p9 = pnand %p324_p8, %p318_p5 }
  0x1a   :  { %328 = shalt.err (!%p325_p9)
}
  0x1b   :  { %26 = dma.hbm_to_vmem [thread:$0]  %s448_s0, 64, %s24_s10, [#allocation4]  }
  0x1c   :  { %s337_s16 = scalar_lea.vmem %s47_s12, 256  ;;  %p342_p11 = scmp.lt.s32.totalorder %s47_s12, %s47_s12 }
  0x1d   :  { %p338_p10 = scmp.ne.s32.totalorder %s47_s12, %s337_s16  ;;  %p343_p12 = scmp.lt.s32.totalorder %s337_s16, %s337_s16 }
  0x1f   :  { %p344_p13 = por %p343_p12, %p342_p11 }
  0x21   :  { %p345_p0 = pnand %p344_p13, %p338_p10 }
  0x23   :  { %348 = shalt.err (!%p345_p0)
}
  0x24   :  { %52 = dma.hbm_to_vmem [thread:$0]  %s451_s3, 256, %s47_s12, [#allocation7], %s376_s29, %s376_s29, %s377_s30  }
  0x25   :  { %369 = dma.done.wait [#allocation4], 64  }
  0x26   :  { %370 = vsyncadd [#allocation4], 4294967232 }
  0x27   :  { %371 = dma.done.wait [#allocation7], 384  }
  0x28   :  { %372 = vsyncadd [#allocation7], 4294966912  ;;  %v380_v1 = vmov 0.0   ;;  %vm381_vm0 = vmmov 0   ;;  %v286_v2 = vld [vmem:[#allocation6] sm:$0xff]   ;;  %vm85_vm1 = vcmask 130048   ;;  %v218_v28 = vlaneseq }
  0x29   :  { %262 = vmatprep.subr.bf16.mxu0 %v380_v1  ;;  %264 = vmatprep.mubr.msk.bf16.mxu0 %vm381_vm0, %v380_v1  ;;  %v69_v3 = vld [vmem:[#allocation3] sm:$0xf]  ;;  %v287_v4 = vld [vmem:[#allocation8 + $0x8] sm:$0xff]   ;;  %v288_v5 = vld [vmem:[#allocation8] sm:$0xff]   ;;  %vm155_vm2 = vcmask 261120   ;;  %v382_v15 = vmov 0  }
  0x2a   :  { %268 = vmatprep.subr.bf16.mxu1 %v380_v1  ;;  %272 = vmatprep.mubr.msk.bf16.mxu1 %vm381_vm0, %v380_v1  ;;  %v249_v6 = vld [vmem:[%s450_s2] ss:$0 sm:$0xff]  ;;  %v219_v29 = vshrl.u32 %v218_v28, 7  ;;  %v225_v32 = vand.u32 127, %v218_v28  ;;  %vm231_vm3 = vcmask 57344  }
  0x2b   :  { %263 = vmatpush3.bf16.msra.mxu0 %v286_v2  ;;  %269 = vmatpush3.bf16.msra.mxu1 %v287_v4  ;;  %v252_v16 = vld [vmem:[%s452_s4] ss:$0 sm:$0xff]  ;;  %s383_s4 = smov [#allocation9]  }
  0x2c   :  { %270 = vmatprep.subr.bf16.mxu1 %v380_v1  ;;  %285 = vset.pattern.permute.xlu0 %v382_v15  ;;  %v256_v22 = vld [vmem:[%s453_s5] ss:$0 sm:$0xff]  ;;  %v220_v31 = vsub.s32 0, %v219_v29  ;;  %v228_v34 = vsub.s32 %v225_v32, %v219_v29  ;;  %s239_s21 = sshll.u32 %s383_s4, 4  ;;  %s240_s21 = int_to_ptr.vmem [resolvable:$true] %s239_s21 }
  0x2d   :  { %v212_v27 = vld [vmem:[#allocation2] sm:$0x1]  ;;  %s349_s5 = scalar_lea.vmem %s240_s21, 16  ;;  %s353_s22 = scalar_lea.vmem %s240_s21, 32 }
  0x2e   :  { %265 = vmatmul.mubr.msk.bf16.vlgmr.msra.gmra.mxu0 %vm85_vm1, %v69_v3  ;;  %p350_p1 = scmp.ne.s32.totalorder %s240_s21, %s349_s5  ;;  %p354_p2 = scmp.lt.s32.totalorder %s240_s21, %s240_s21 }
  0x2f   :  { %271 = vmatpush3.bf16.msra.mxu1 %v288_v5  ;;  %p355_p3 = scmp.lt.s32.totalorder %s353_s22, %s349_s5 }
  0x31   :  { %p356_p4 = por %p355_p3, %p354_p2 }
  0x33   :  { %p357_p5 = pnand %p356_p4, %p350_p1 }
  0xee   :  { %v123_v7 = vpop.f32.mrf.mxu0 }
  0xef   :  { %v124_v8 = vadd.f32 %v249_v6, %v123_v7 }
  0xf0   :  { %v266_v9 = vpop.f32.mrf.mxu0 }
  0xf1   :  { %v129_v10 = vmul.f32 0.2, %v124_v8 }
  0xf2   :  { %v126_v11 = vpop.f32.mrf.mxu0 }
  0xf3   :  { %v130_v12 = vmax.f32 %v124_v8, %v129_v10 }
  0xf4   :  { %v267_v13 = vpop.f32.mrf.mxu0 }
  0xf5   :  { %v131_v14 = vpack.c.bf16 %v130_v12, %v130_v12 }
  0xf7   :  { %273 = vmatmul.mubr.msk.bf16.vlgmr.msra.gmra.mxu1 %vm155_vm2, %v131_v14 }
 0x1b7   :  { %v193_v17 = vpop.f32.mrf.mxu1 }
 0x1b8   :  { %v194_v18 = vadd.f32 %v252_v16, %v193_v17 }
 0x1b9   :  { %v274_v19 = vpop.f32.mrf.mxu1 }
 0x1ba   :  { %v199_v20 = vmul.f32 0.2, %v194_v18 }
 0x1bb   :  { %v196_v21 = vpop.f32.mrf.mxu1 }
 0x1bc   :  { %v200_v23 = vmax.f32 %v194_v18, %v199_v20 }
 0x1bd   :  { %v275_v24 = vpop.f32.mrf.mxu1 }
 0x1be   :  { %v208_v25 = vmul.f32 %v256_v22, %v200_v23 }
 0x1c0   :  { %v209_v26 = vsel %vm155_vm2, %v208_v25, 0.0 }
 0x1c1   :  { %210 = vadd.xlane.f32.xlu0 %v209_v26 }
 0x1d7   :  { %215 = vperm.xlu0 %285, %v212_v27  }
 0x24a   :  { %v211_v30 = vpop.xlane.xlu0 %210 }
 0x252   :  { %v216_v33 = vpop.permute.xlu0 %215 }
 0x253   :  { %v221_v35 = vrot.slane %v216_v33, %v220_v31 }
 0x255   :  { %v222_v36 = vadd.f32 %v221_v35, %v211_v30 }
 0x257   :  { %v229_v37 = vrot.slane %v222_v36, %v228_v34 }
 0x259   :  { %232 = vst.msk [vmem:[#allocation9] sm:$0x1] %vm231_vm3, %v229_v37 }
 0x25a   :  { %360 = shalt.err (!%p357_p5)
}
 0x25b   :  { %242 = dma.vmem_to_hbm [thread:$0]  %s240_s21, 16, %s455_s7, [#allocation5]  }
 0x25c   :  { %373 = dma.done.wait [#allocation5], 16  }
 0x25d   :  { %374 = vsyncadd [#allocation5], 4294967280 }
 0x25e   :  { %246 = vsyncpa [#allocation4], 1 }
 0x25f   :  { %247 = vsyncpa [#allocation7], 1 }
 0x260   :  { %248 = vsyncpa [#allocation5], 1 }

</bundles_post_ra>
